<compile_context>
chip_gen: v7x
topology: tpu7x:2x2x1
jax: 0.10.0
libtpu: 0.0.40
codegen_flags: <defaults>
</compile_context>

<pallas_src>
import jax
import jax.numpy as jnp
from jax.experimental import pallas as pl
from jax.experimental.pallas import tpu as pltpu


def encoder_seq_kernel(x_ref,        # VMEM (1, Bt, 4H)  fused emb@Wi + bi + bh for this step
                       wh_ref,       # VMEM (H, 4H)      h2h weight, grid-resident
                       c0_ref,       # VMEM (Bt, H)      initial cell state
                       h0_ref,       # VMEM (Bt, H)      initial hidden state
                       out_ref,      # VMEM (1, Bt, 2H)  packed [cy | hy] for this step
                       c_st, h_st):  # VMEM scratch      carried recurrent state
    t = pl.program_id(1)
    H = c0_ref.shape[1]

    # (Re-)initialize the carried state at the start of every batch block's
    # time loop (time is the inner, "arbitrary" grid axis).
    @pl.when(t == 0)
    def _():
        c_st[...] = c0_ref[...]
        h_st[...] = h0_ref[...]

    # gates = x @ Wi + bi + bh  (precomputed, streamed in)  +  h @ Wh
    gates = x_ref[0] + jnp.dot(h_st[...], wh_ref[...],
                               preferred_element_type=jnp.float32)   # (Bt, 4H)

    ingate     = jax.nn.sigmoid(gates[:, 0 * H:1 * H])
    forgetgate = jax.nn.sigmoid(gates[:, 1 * H:2 * H])
    cellgate   = jnp.tanh(gates[:, 2 * H:3 * H])
    outgate    = jax.nn.sigmoid(gates[:, 3 * H:4 * H])
    # TODO(synk): dropout / dropoutrec omitted (p=0 / eval mode -> identity).

    cy = forgetgate * c_st[...] + ingate * cellgate
    hy = outgate * jnp.tanh(cy)

    c_st[...] = cy
    h_st[...] = hy
    # Single lane-dense (Bt, 2H) store per step.
    out_ref[0] = jnp.concatenate([cy, hy], axis=-1)


def encoder_sequence_forward(tokens, c0, h0, params, *, batch_tile=None):
    """tokens: (T, B) int32; c0/h0: (B, H) f32.

    Returns (cy_seq, hy_seq), each (T, B, H) — Encoder.forward outputs for
    every timestep (final state is the last row of each).
    """
    table, wi, bi, wh, bh = params
    T, B = tokens.shape
    V, H = table.shape
    Bt = B if batch_tile is None else batch_tile
    assert B % Bt == 0

    # Fold embedding + i2h Linear + BOTH biases into one table (one-time cost,
    # reused for every timestep).
    # TODO(synk): for very large vocab, gather (B, H) embedding rows instead
    # and do x @ wi on the otherwise-idle MXU to avoid the 4x HBM blow-up.
    fused_table = (table @ wi + bi + bh).astype(jnp.float32)           # (V, 4H)

    # Wrapper-side gather: vocab-independent activations, streamed per step by
    # the auto-pipeline (prefetches t+1 while t computes).
    x_all = jnp.take(fused_table, tokens, axis=0)                      # (T, B, 4H)

    grid = (B // Bt, T)                                                # (parallel, time)

    out = pl.pallas_call(
        encoder_seq_kernel,
        out_shape=jax.ShapeDtypeStruct((T, B, 2 * H), jnp.float32),
        grid_spec=pltpu.PrefetchScalarGridSpec(
            num_scalar_prefetch=0,
            grid=grid,
            in_specs=[
                pl.BlockSpec((1, Bt, 4 * H), lambda b, t: (t, b, 0)),  # per-step activations
                pl.BlockSpec((H, 4 * H),     lambda b, t: (0, 0)),     # wh resident
                pl.BlockSpec((Bt, H),        lambda b, t: (b, 0)),     # c0 resident
                pl.BlockSpec((Bt, H),        lambda b, t: (b, 0)),     # h0 resident
            ],
            out_specs=pl.BlockSpec((1, Bt, 2 * H), lambda b, t: (t, b, 0)),
            scratch_shapes=[
                pltpu.VMEM((Bt, H), jnp.float32),                      # carried c
                pltpu.VMEM((Bt, H), jnp.float32),                      # carried h
            ],
        ),
        compiler_params=pltpu.CompilerParams(
            # Batch blocks are independent (megacore-shardable on v7x);
            # the time axis carries the recurrence.
            dimension_semantics=("parallel", "arbitrary"),
            vmem_limit_bytes=32 * 1024 * 1024,
        ),
    )(x_all, wh, c0, h0)

    return out[:, :, :H], out[:, :, H:]


def reference_sequence(tokens, c0, h0, params):
    """Pure-JAX per-step reference matching the PyTorch Encoder/LSTM math."""
    table, wi, bi, wh, bh = params
    H = table.shape[1]
    c, h = c0, h0
    cys, hys = [], []
    for t in range(tokens.shape[0]):
        x = jnp.take(table, tokens[t], axis=0)
        gates = x @ wi + bi + h @ wh + bh
        i = jax.nn.sigmoid(gates[:, 0 * H:1 * H])
        f = jax.nn.sigmoid(gates[:, 1 * H:2 * H])
        g = jnp.tanh(gates[:, 2 * H:3 * H])
        o = jax.nn.sigmoid(gates[:, 3 * H:4 * H])
        c = f * c + i * g
        h = o * jnp.tanh(c)
        cys.append(c)
        hys.append(h)
    return jnp.stack(cys), jnp.stack(hys)


if __name__ == "__main__":
    # Small shapes consistent with the module: vocab=64, hidden=32, batch=8, seq=6.
    VOCAB, HIDDEN, BATCH, SEQ = 64, 32, 8, 6
    INIT_W = 0.08  # opt.init_weight

    key = jax.random.PRNGKey(0)
    k_tab, k_wi, k_bi, k_wh, k_bh, k_idx, k_c, k_h = jax.random.split(key, 8)

    # Deterministic uniform(-init_weight, init_weight) init (as in __initParameters).
    table = jax.random.uniform(k_tab, (VOCAB, HIDDEN), jnp.float32, -INIT_W, INIT_W)
    wi = jax.random.uniform(k_wi, (HIDDEN, 4 * HIDDEN), jnp.float32, -INIT_W, INIT_W)
    bi = jax.random.uniform(k_bi, (1, 4 * HIDDEN), jnp.float32, -INIT_W, INIT_W)
    wh = jax.random.uniform(k_wh, (HIDDEN, 4 * HIDDEN), jnp.float32, -INIT_W, INIT_W)
    bh = jax.random.uniform(k_bh, (1, 4 * HIDDEN), jnp.float32, -INIT_W, INIT_W)
    params = (table, wi, bi, wh, bh)

    tokens = jax.random.randint(k_idx, (SEQ, BATCH), 0, VOCAB, dtype=jnp.int32)
    c0 = jax.random.normal(k_c, (BATCH, HIDDEN), jnp.float32)
    h0 = jax.random.normal(k_h, (BATCH, HIDDEN), jnp.float32)

    cy_seq, hy_seq = encoder_sequence_forward(tokens, c0, h0, params)
    jax.block_until_ready((cy_seq, hy_seq))

    cy_ref, hy_ref = reference_sequence(tokens, c0, h0, params)
    assert jnp.allclose(cy_seq, cy_ref, atol=3e-5), "cy mismatch"
    assert jnp.allclose(hy_seq, hy_ref, atol=3e-5), "hy mismatch"

    print("KERNEL_OK")
</pallas_src>

<mosaic_0001>
module attributes {stable_mosaic.version = 11 : i64} {
  func.func @encoder_seq_kernel(%arg0: i32, %arg1: i32, %arg2: memref<1x8x128xf32, #tpu.memory_space<vmem>>, %arg3: memref<32x128xf32, #tpu.memory_space<vmem>>, %arg4: memref<8x32xf32, #tpu.memory_space<vmem>>, %arg5: memref<8x32xf32, #tpu.memory_space<vmem>>, %arg6: memref<1x8x64xf32, #tpu.memory_space<vmem>>, %arg7: memref<8x32xf32, #tpu.memory_space<vmem>>, %arg8: memref<8x32xf32, #tpu.memory_space<vmem>>) attributes {dimension_semantics = [#tpu.dimension_semantics<parallel>, #tpu.dimension_semantics<arbitrary>], iteration_bounds = array<i64: 1, 6>, scalar_prefetch = 0 : i64, scratch_operands = 2 : i64, tpu.core_type = #tpu.core_type<tc>, window_params = [{transform_indices = @transform_0, window_bounds = array<i64: 1, 8, 128>}, {pipeline_mode = #tpu.pipeline_mode<synchronous>, transform_indices = @transform_1, window_bounds = array<i64: 32, 128>}, {transform_indices = @transform_2, window_bounds = array<i64: 8, 32>}, {transform_indices = @transform_3, window_bounds = array<i64: 8, 32>}, {transform_indices = @transform_4, window_bounds = array<i64: 1, 8, 64>}]} {
    %c0_i32 = arith.constant 0 : i32
    %0 = arith.cmpi eq, %arg1, %c0_i32 : i32
    %1 = arith.extui %0 : i1 to i32
    %c0_i32_0 = arith.constant 0 : i32
    %2 = arith.cmpi ne, %1, %c0_i32_0 : i32
    scf.if %2 {
      %c0_19 = arith.constant 0 : index
      %c0_20 = arith.constant 0 : index
      %41 = vector.load %arg4[%c0_19, %c0_20] : memref<8x32xf32, #tpu.memory_space<vmem>>, vector<8x32xf32>
      %c0_21 = arith.constant 0 : index
      %c0_22 = arith.constant 0 : index
      %42 = vector.load %arg7[%c0_21, %c0_22] : memref<8x32xf32, #tpu.memory_space<vmem>>, vector<8x32xf32>
      tpu.vector_store %arg7[%c0_21, %c0_22], %41 {strides = array<i32>} : memref<8x32xf32, #tpu.memory_space<vmem>>, vector<8x32xf32>,
      %c0_23 = arith.constant 0 : index
      %c0_24 = arith.constant 0 : index
      %43 = vector.load %arg5[%c0_23, %c0_24] : memref<8x32xf32, #tpu.memory_space<vmem>>, vector<8x32xf32>
      %c0_25 = arith.constant 0 : index
      %c0_26 = arith.constant 0 : index
      %44 = vector.load %arg8[%c0_25, %c0_26] : memref<8x32xf32, #tpu.memory_space<vmem>>, vector<8x32xf32>
      tpu.vector_store %arg8[%c0_25, %c0_26], %43 {strides = array<i32>} : memref<8x32xf32, #tpu.memory_space<vmem>>, vector<8x32xf32>,
    } else {
    }
    %c0 = arith.constant 0 : index
    %c0_1 = arith.constant 0 : index
    %c0_2 = arith.constant 0 : index
    %3 = vector.load %arg2[%c0, %c0_1, %c0_2] : memref<1x8x128xf32, #tpu.memory_space<vmem>>, vector<1x8x128xf32>
    %4 = vector.shape_cast %3 : vector<1x8x128xf32> to vector<8x128xf32>
    %c0_3 = arith.constant 0 : index
    %c0_4 = arith.constant 0 : index
    %5 = vector.load %arg8[%c0_3, %c0_4] : memref<8x32xf32, #tpu.memory_space<vmem>>, vector<8x32xf32>
    %c0_5 = arith.constant 0 : index
    %c0_6 = arith.constant 0 : index
    %6 = vector.load %arg3[%c0_5, %c0_6] : memref<32x128xf32, #tpu.memory_space<vmem>>, vector<32x128xf32>
    %cst = arith.constant dense<0.000000e+00> : vector<8x128xf32>
    %7 = tpu.matmul %5, %6, %cst {dimension_numbers = #tpu.dot_dimension_numbers<[1], [0], [0], [1], [0, 0, 1, 1], [], []>} : vector<8x32xf32>, vector<32x128xf32>, vector<8x128xf32> -> vector<8x128xf32>
    %8 = arith.addf %4, %7 : vector<8x128xf32>
    %9 = vector.extract_strided_slice %8 {offsets = [0, 0], sizes = [8, 32], strides = [1, 1]} : vector<8x128xf32> to vector<8x32xf32>
    %10 = arith.negf %9 : vector<8x32xf32>
    %11 = math.exp %10 : vector<8x32xf32>
    %cst_7 = arith.constant 1.000000e+00 : f32
    %12 = vector.broadcast %cst_7 : f32 to vector<8x32xf32>
    %13 = arith.addf %12, %11 : vector<8x32xf32>
    %14 = arith.divf %12, %13 : vector<8x32xf32>
    %15 = vector.extract_strided_slice %8 {offsets = [0, 32], sizes = [8, 32], strides = [1, 1]} : vector<8x128xf32> to vector<8x32xf32>
    %16 = arith.negf %15 : vector<8x32xf32>
    %17 = math.exp %16 : vector<8x32xf32>
    %cst_8 = arith.constant 1.000000e+00 : f32
    %18 = vector.broadcast %cst_8 : f32 to vector<8x32xf32>
    %19 = arith.addf %18, %17 : vector<8x32xf32>
    %20 = arith.divf %18, %19 : vector<8x32xf32>
    %21 = vector.extract_strided_slice %8 {offsets = [0, 64], sizes = [8, 32], strides = [1, 1]} : vector<8x128xf32> to vector<8x32xf32>
    %22 = math.tanh %21 : vector<8x32xf32>
    %23 = vector.extract_strided_slice %8 {offsets = [0, 96], sizes = [8, 32], strides = [1, 1]} : vector<8x128xf32> to vector<8x32xf32>
    %24 = arith.negf %23 : vector<8x32xf32>
    %25 = math.exp %24 : vector<8x32xf32>
    %cst_9 = arith.constant 1.000000e+00 : f32
    %26 = vector.broadcast %cst_9 : f32 to vector<8x32xf32>
    %27 = arith.addf %26, %25 : vector<8x32xf32>
    %28 = arith.divf %26, %27 : vector<8x32xf32>
    %c0_10 = arith.constant 0 : index
    %c0_11 = arith.constant 0 : index
    %29 = vector.load %arg7[%c0_10, %c0_11] : memref<8x32xf32, #tpu.memory_space<vmem>>, vector<8x32xf32>
    %30 = arith.mulf %20, %29 : vector<8x32xf32>
    %31 = arith.mulf %14, %22 : vector<8x32xf32>
    %32 = arith.addf %30, %31 : vector<8x32xf32>
    %33 = math.tanh %32 : vector<8x32xf32>
    %34 = arith.mulf %28, %33 : vector<8x32xf32>
    %c0_12 = arith.constant 0 : index
    %c0_13 = arith.constant 0 : index
    %35 = vector.load %arg7[%c0_12, %c0_13] : memref<8x32xf32, #tpu.memory_space<vmem>>, vector<8x32xf32>
    tpu.vector_store %arg7[%c0_12, %c0_13], %32 {strides = array<i32>} : memref<8x32xf32, #tpu.memory_space<vmem>>, vector<8x32xf32>,
    %c0_14 = arith.constant 0 : index
    %c0_15 = arith.constant 0 : index
    %36 = vector.load %arg8[%c0_14, %c0_15] : memref<8x32xf32, #tpu.memory_space<vmem>>, vector<8x32xf32>
    tpu.vector_store %arg8[%c0_14, %c0_15], %34 {strides = array<i32>} : memref<8x32xf32, #tpu.memory_space<vmem>>, vector<8x32xf32>,
    %37 = tpu.concatenate %32, %34 in 1 : vector<8x32xf32>, vector<8x32xf32> -> vector<8x64xf32>
    %c0_16 = arith.constant 0 : index
    %c0_17 = arith.constant 0 : index
    %c0_18 = arith.constant 0 : index
    %38 = vector.load %arg6[%c0_16, %c0_17, %c0_18] : memref<1x8x64xf32, #tpu.memory_space<vmem>>, vector<1x8x64xf32>
    %39 = vector.shape_cast %38 : vector<1x8x64xf32> to vector<8x64xf32>
    %40 = vector.shape_cast %37 : vector<8x64xf32> to vector<1x8x64xf32>
    tpu.vector_store %arg6[%c0_16, %c0_17, %c0_18], %40 {strides = array<i32>} : memref<1x8x64xf32, #tpu.memory_space<vmem>>, vector<1x8x64xf32>,
    return
  }
  func.func @transform_0(%arg0: i32, %arg1: i32) -> (i32, i32, i32) {
    %c0_i32 = arith.constant 0 : i32
    %c0_i32_0 = arith.constant 0 : i32
    return %arg1, %arg0, %c0_i32 : i32, i32, i32
  }
  func.func @transform_1(%arg0: i32, %arg1: i32) -> (i32, i32) {
    %c0_i32 = arith.constant 0 : i32
    %c0_i32_0 = arith.constant 0 : i32
    %c0_i32_1 = arith.constant 0 : i32
    return %c0_i32, %c0_i32_0 : i32, i32
  }
  func.func @transform_2(%arg0: i32, %arg1: i32) -> (i32, i32) {
    %c0_i32 = arith.constant 0 : i32
    %c0_i32_0 = arith.constant 0 : i32
    return %arg0, %c0_i32 : i32, i32
  }
  func.func @transform_3(%arg0: i32, %arg1: i32) -> (i32, i32) {
    %c0_i32 = arith.constant 0 : i32
    %c0_i32_0 = arith.constant 0 : i32
    return %arg0, %c0_i32 : i32, i32
  }
  func.func @transform_4(%arg0: i32, %arg1: i32) -> (i32, i32, i32) {
    %c0_i32 = arith.constant 0 : i32
    %c0_i32_0 = arith.constant 0 : i32
    return %arg1, %arg0, %c0_i32 : i32, i32, i32
  }
}

</mosaic_0001>

<bundles_post_ra>
// kernel: tpu_custom_call.1
= control target key start
LH: loop header
LB: loop body
LE: loop exit
PB: predicated region body
PF: predicated region fallthrough
CT: control target
= control target key end

     0   :  { %9 = vsyncpa [#allocation5], 0  ;;  %s1156_s0 = inlined_call_operand.hbm [shape: f32[6,8,128], index: 0, kind: input, shape index: {}]   ;;  %s1157_s1 = inlined_call_operand.hbm [shape: f32[32,128], index: 1, kind: input, shape index: {}]   ;;  %s1158_s2 = inlined_call_operand.hbm [shape: f32[8,32], index: 2, kind: input, shape index: {}]   ;;  %s1159_s3 = inlined_call_operand.vmem [shape: f32[8,32], index: 3, kind: input, shape index: {}]   ;;  %s1160_s4 = inlined_call_operand.hbm [shape: f32[6,8,64], index: 4, kind: output, shape index: {}]  }
   0x1   :  { %11 = vsyncpa [#allocation5 + $0x1], 0 }
   0x2   :  { %12 = vsyncpa [#allocation8], 0 }
   0x3   :  { %13 = vsyncpa [#allocation6], 0 }
   0x4   :  { %15 = vsyncpa [#allocation6 + $0x1], 0  ;;  %s900_s15 = smov 0   ;;  %s902_s16 = smov 0  }
   0x5   :  { %s904_s17 = smov 0   ;;  %s906_s18 = smov 0  }
   0x6   :  { %s908_s19 = smov 0   ;;  %s910_s20 = smov 0  }
   0x7 LB: > { %s547_s21 = sadd.s32 4294967295, %s861_s20   ;;  %s548_s22 = sadd.s32 4294967294, %s861_s20   ;;  %s861_s20 = sphi %s910_s20, %s21_s20   ;;  %s857_s19 = sphi %s908_s19, %s1182_s19   ;;  %s853_s18 = sphi %s906_s18, %s1181_s18   ;;  %s849_s17 = sphi %s904_s17, %s1180_s17   ;;  %s845_s16 = sphi %s902_s16, %s1179_s16   ;;  %s841_s15 = sphi %s900_s15, %s1178_s15  }
   0x8   : > { %p55_p0 = scmp.ne.s32.totalorder %s845_s16, %s841_s15  ;;  %p934_p1 = scmp.eq.s32.totalorder %s547_s21, 0 }
   0x9   : > { %p938_p2 = scmp.eq.s32.totalorder %s547_s21, 5  ;;  %p160_p3 = scmp.eq.s32.totalorder %s548_s22, 5 }
   0xa   : > { %s1165_s23 = scalar_select %p934_p1, 1, 0 }
   0xb   : > { %s1166_s24 = scalar_select %p938_p2, 1, 0 }
   0xc   : > { %p944_p4 = por %p934_p1, %p55_p0  ;;  %p549_p5 = scmp.ge.s32.totalorder %s861_s20, 1 }
   0xd   : > { %p949_p6 = por %p160_p3, %p55_p0  ;;  %p167_p7 = scmp.lt.s32.totalorder %s861_s20, 7 }
   0xe   : > { %s1167_s25 = scalar_select %p944_p4, 1, 0 }
   0xf   : > { %s1168_s26 = scalar_select %p949_p6, 1, 0 }
  0x10   : > { %p954_p8 = pnand %p549_p5, %p167_p7  ;;  %s863_s28 = smov [#allocation7]  }
  0x11   : > { %s179_s29 = sshll.u32 %s863_s28, 4  ;;  %s864_s5 = smov [#allocation9]   ;;  %s180_s29 = int_to_ptr.vmem [resolvable:$true] %s179_s29 }
  0x12   : > { %s1169_s27 = scalar_select %p954_p8, 1, 0 }
  0x13   : > { %p602_p9 = pneg %p954_p8  ;;  %s195_s6 = sshll.u32 %s864_s5, 4  ;;  %s966_s6 = int_to_ptr.vmem [resolvable:$true] %s195_s6 }
  0x14   : > { %s689_s9 = scalar_lea.hbm %s1157_s1, 512 }
  0x15   : > { %p962_p10 = pnand %p602_p9, %p934_p1  ;;  %p690_p11 = scmp.ne.s32.totalorder %s1157_s1, %s689_s9 }
  0x16   : > { %p696_p3 = scmp.lt.u32.totalorder %s689_s9, %s1157_s1 }
  0x17   : > { %p691_p12 = pneg %p962_p10 }
  0x19   : > { %p692_p13 = pnand %p691_p12, %p690_p11 }
  0x1b   : > { %p693_p0 = pneg %p692_p13 }
  0x1d   : > { %p698_p5 = pnand %p696_p3, %p693_p0 }
  0x1f   : > { %701 = shalt.err (!%p698_p5)
}
  0x20   : > { %s702_s14 = scalar_lea.vmem %s180_s29, 512  ;;  %p710_p1 = scmp.lt.s32.totalorder %s180_s29, %s180_s29 }
  0x21   : > { %p703_p7 = scmp.ne.s32.totalorder %s180_s29, %s702_s14  ;;  %p711_p4 = scmp.lt.s32.totalorder %s702_s14, %s702_s14 }
  0x23   : > { %p705_p9 = pnand %p703_p7, %p691_p12  ;;  %p712_p8 = por %p711_p4, %p710_p1 }
  0x25   : > { %p706_p6 = pneg %p705_p9 }
  0x27   : > { %p713_p2 = pnand %p712_p8, %p706_p6 }
  0x29   : > { %716 = shalt.err (!%p713_p2)
}
  0x2a   : > { %s865_s21 = smov 128   ;;  %s866_s22 = smov 8  }
  0x2b   : > { %605 = dma.hbm_to_vmem [thread:$0]  (!%p962_p10), %s1157_s1, 512, %s180_s29, [#allocation8], %s865_s21, %s865_s21, %s866_s22  }
  0x2c   : > { %s717_s9 = scalar_lea.hbm %s1158_s2, 128 }
  0x2d   : > { %p718_p11 = scmp.ne.s32.totalorder %s1158_s2, %s717_s9  ;;  %p724_p4 = scmp.lt.u32.totalorder %s717_s9, %s1158_s2 }
  0x2f   : > { %p720_p1 = pnand %p718_p11, %p691_p12 }
  0x31   : > { %p721_p2 = pneg %p720_p1 }
  0x33   : > { %p726_p6 = pnand %p724_p4, %p721_p2 }
  0x35   : > { %729 = shalt.err (!%p726_p6)
}
  0x36   : > { %s730_s29 = scalar_lea.vmem %s966_s6, 128  ;;  %p738_p3 = scmp.lt.s32.totalorder %s966_s6, %s966_s6 }
  0x37   : > { %p731_p8 = scmp.ne.s32.totalorder %s966_s6, %s730_s29  ;;  %p739_p5 = scmp.lt.s32.totalorder %s730_s29, %s730_s29 }
  0x39   : > { %p733_p13 = pnand %p731_p8, %p691_p12  ;;  %p740_p7 = por %p739_p5, %p738_p3 }
  0x3b   : > { %p734_p0 = pneg %p733_p13 }
  0x3d   : > { %p741_p9 = pnand %p740_p7, %p734_p0 }
  0x3f   : > { %744 = shalt.err (!%p741_p9)
}
  0x40   : > { %608 = dma.hbm_to_vmem [thread:$0]  (!%p962_p10), %s1158_s2, 128, %s966_s6, [#allocation8]  }
  0x41   : > { %s30_s22 = sadd.s32 1, %s857_s19  ;;  %s42_s28 = sadd.s32 1, %s849_s17 }
  0x42   : > { %p31_p12 = scmp.ge.s32.totalorder %s30_s22, 6  ;;  %p49_p11 = scmp.ne.s32.totalorder %s849_s17, %s845_s16 }
  0x43   : > { %p50_p1 = scmp.eq.s32.totalorder %s861_s20, 0  ;;  %p619_p2 = scmp.lt.s32.totalorder %s861_s20, 6 }
  0x44   : > { %s1184_s22 = smov (%p31_p12, %s30_s22), 0  ;;  %p1171_p6 = scmp.ne.s32.totalorder %s1166_s24, 0 }
  0x45   : > { %p51_p4 = por %p50_p1, %p49_p11  ;;  %s37_s5 = ssub.s32 %s857_s19, %s1184_s22 }
  0x46   : > { %p1025_p8 = por %p1171_p6, %p49_p11  ;;  %s213_s7 = sand.u32 1, %s849_s17  }
  0x47   : > { %p40_p13 = scmp.eq.s32.totalorder %s37_s5, 0  ;;  %s554_s6 = sshll.u32 %s213_s7, 3 }
  0x48   : > { %s555_s8 = sshll.u32 %s857_s19, 7  ;;  %s217_s24 = scalar_lea.vmem [#allocation4], %s554_s6 }
  0x49   : > { %s1034_s9 = scalar_select %p40_p13, %s849_s17, %s42_s28  }
  0x4a   : > { %s1039_s12 = scalar_lea.hbm %s1156_s0, %s555_s8  ;;  %s225_s13 = sshll.u32 %s217_s24, 4  ;;  %s1047_s13 = int_to_ptr.vmem [resolvable:$true] %s225_s13 }
  0x4b   : > { %p1043_p10 = pnand %p619_p2, %p51_p4  ;;  %s214_s14 = scalar_lea.sflag [#allocation5], %s213_s7 }
  0x4c   : > { %s745_s21 = scalar_lea.hbm %s1039_s12, 128  ;;  %s750_s6 = scalar_lea.hbm %s1156_s0, 768 }
  0x4d   : > { %p746_p0 = scmp.ne.s32.totalorder %s1039_s12, %s745_s21  ;;  %p747_p3 = pneg %p1043_p10 }
  0x4e   : > { %p751_p9 = scmp.lt.u32.totalorder %s1039_s12, %s1156_s0  ;;  %p752_p12 = scmp.lt.u32.totalorder %s750_s6, %s745_s21 }
  0x4f   : > { %p748_p5 = pnand %p747_p3, %p746_p0  ;;  %p754_p1 = scmp.lt.u32.totalorder %s745_s21, %s1039_s12 }
  0x50   : > { %p753_p11 = por %p752_p12, %p751_p9 }
  0x51   : > { %p749_p7 = pneg %p748_p5 }
  0x52   : > { %p755_p2 = por %p754_p1, %p753_p11 }
  0x54   : > { %p756_p4 = pnand %p755_p2, %p749_p7 }
  0x56   : > { %759 = shalt.err (!%p756_p4)
}
  0x57   : > { %s760_s7 = scalar_lea.vmem %s1047_s13, 128  ;;  %s867_s11 = smov [#allocation4]  }
  0x58   : > { %p761_p6 = scmp.ne.s32.totalorder %s1047_s13, %s760_s7  ;;  %s765_s24 = sshll.u32 %s867_s11, 4  ;;  %s766_s24 = int_to_ptr.vmem [resolvable:$false] %s765_s24 }
  0x59   : > { %s767_s28 = scalar_lea.vmem %s766_s24, 256  ;;  %p768_p5 = scmp.lt.s32.totalorder %s1047_s13, %s766_s24 }
  0x5a   : > { %p763_p13 = pnand %p761_p6, %p747_p3  ;;  %p769_p9 = scmp.lt.s32.totalorder %s767_s28, %s760_s7 }
  0x5c   : > { %p764_p0 = pneg %p763_p13  ;;  %p770_p12 = por %p769_p9, %p768_p5 }
  0x5e   : > { %p771_p11 = pnand %p770_p12, %p764_p0 }
  0x60   : > { %774 = shalt.err (!%p771_p11)
}
  0x61   : > { %612 = dma.hbm_to_vmem [thread:$0]  (!%p1043_p10), %s1039_s12, 128, %s1047_s13, %s214_s14  }
  0x62   : > { %p1174_p7 = scmp.ne.s32.totalorder %s1169_s27, 0 }
  0x63   : > { %s1077_s21 = sand.u32 (!%p1174_p7), 1, %s845_s16   ;;  %p1175_p3 = scmp.ne.s32.totalorder (!%p1174_p7), %s1167_s25, 0 }
  0x64   : > { %234 = sbr.rel (%p1174_p7) target bundleno = 847 (0x34f), region = 36  ;;  %s557_s5 = sshll.u32 (!%p1174_p7), %s1077_s21, 3 }
  0x65   : > { %s237_s6 = scalar_lea.sflag (!%p1174_p7), [#allocation5], %s1077_s21  ;;  %s1081_s8 = scalar_lea.vmem (!%p1174_p7), [#allocation4], %s557_s5 }
  0x6b   : > { %828 = dma.done.wait (%p1175_p3), %s237_s6, 128  }
  0x6c   : > { %830 = vsyncadd (%p1175_p3), %s237_s6, 4294967168  ;;  %p1176_p10 = scmp.ne.s32.totalorder %s1165_s23, 0 }
  0x6e   : > { %832 = dma.done.wait (%p1176_p10), [#allocation8], 640  }
  0x6f   : > { %834 = vsyncadd (%p1176_p10), [#allocation8], 4294966656  ;;  %s1091_s27 = scalar_lea.vmem [#allocation10], %s557_s5  ;;  %p561_p1 = scmp.ne.s32.totalorder %s853_s18, 0 }
  0x70   : > { %v285_v0 = vld [vmem:[#allocation9] sm:$0xff] (!%p561_p1)  ;;  %vm286_vm0 = vcmask (!%p561_p1), 261120  }
  0x71   : > { %284 = sbr.rel (%p561_p1) target bundleno = 120 (0x78), region = 52  ;;  %v288_v1 = vld [vmem:[%s1159_s3] sm:$0xff] (!%p561_p1)  ;;  %287 = vst.msk [vmem:[#allocation2] sm:$0xff] (!%p561_p1), %vm286_vm0, %v285_v0 }
  0x72   : > { %289 = vst.msk [vmem:[#allocation3] sm:$0xff] (!%p561_p1), %vm286_vm0, %v288_v1 }
  0x78 PF: > { %v292_v2 = vld [vmem:[#allocation7] sm:$0xff]  ;;  %v293_v3 = vld [vmem:[#allocation7 + $0x8] sm:$0xff]  ;;  %v294_v4 = vld [vmem:[#allocation7 + $0x10] sm:$0xff]  ;;  %v868_v5 = vmov 0.0|0.0   ;;  %vm869_vm1 = vmmov 0   ;;  %v870_v8 = vmov 0.0  }
  0x79   : > { %584 = vmatprep.subr.bf16.mxu0 %v868_v5  ;;  %v585_v6 = vpack.c.bf16 %v293_v3, %v292_v2  ;;  %v295_v7 = vld [vmem:[#allocation7 + $0x18] sm:$0xff]  ;;  %581 = vmatprep.mubr.msk.f32.mxu0 %vm869_vm1, %v870_v8  ;;  %v291_v10 = vld [vmem:[#allocation3] sm:$0xff]  ;;  %vm296_vm2 = vcmask 261120   ;;  %s871_s23 = smov 64   ;;  %v378_v16 = vld [vmem:[#allocation2] sm:$0xff]  ;;  %s872_s25 = smov 32  }
  0x7a   : > { %v588_v9 = vpack.c.bf16 %v295_v7, %v294_v4  ;;  %v290_v11 = vld [vmem:[%s1081_s8] sm:$0xff]  ;;  %s873_s29 = smov 96   ;;  %s565_s14 = sshll.u32 %s853_s18, 7  ;;  %vm414_vm3 = vcmask 523264  }
  0x7b   : > { %586 = vmatpush3.bf16.msra.mxu0 %v585_v6  ;;  %s431_s10 = sshll.u32 %s1091_s27, 4  ;;  %s1105_s24 = scalar_lea.hbm %s1160_s4, %s565_s14  ;;  %s1107_s10 = int_to_ptr.vmem [resolvable:$true] %s431_s10 }
  0x7c   : > { %587 = vmatprep.subr.bf16.mxu0 %v868_v5  ;;  %s417_s18 = scalar_lea.sflag [#allocation6], %s1077_s21  ;;  %s775_s28 = scalar_lea.vmem %s1107_s10, 128 }
  0x7d   : > { %p776_p2 = scmp.ne.s32.totalorder %s1107_s10, %s775_s28  ;;  %s874_s5 = smov [#allocation10]  }
  0x7e   : > { %s779_s6 = sshll.u32 %s874_s5, 4  ;;  %s780_s6 = int_to_ptr.vmem [resolvable:$false] %s779_s6 }
  0x7f   : > { %589 = vmatpush3.bf16.msra.mxu0 %v588_v9  ;;  %p777_p4 = pnand %p776_p2, %p1025_p8  ;;  %s781_s8 = scalar_lea.vmem %s780_s6, 256 }
  0x80   : > { %p782_p13 = scmp.lt.s32.totalorder %s1107_s10, %s780_s6  ;;  %p783_p0 = scmp.lt.s32.totalorder %s781_s8, %s775_s28 }
  0x81   : > { %p778_p6 = pneg %p777_p4 }
  0x82   : > { %582 = vmatmul.mubr.msk.f32.vlgmr.msra.gmra.mrb[0].mxu0 %vm296_vm2, %v291_v10  ;;  %p784_p5 = por %p783_p0, %p782_p13 }
  0x84   : > { %p785_p9 = pnand %p784_p5, %p778_p6 }
 0x155   : > { %v366_v12 = vpop.f32.mrb[0].mxu0 }
 0x156   : > { %v370_v13 = vadd.f32 %v366_v12, %v290_v11  ;;  %v583_v14 = vpop.f32.mrb[1].mxu0 }
 0x158   : > { %681 = vtanh.f32 %v370_v13  ;;  %v563_v17 = vmul.f32 -1.442695, %v370_v13 }
 0x15a   : > { %683 = vpow2.f32 %v563_v17 }
 0x162   : > { %v682_v15 = vpop.eup %681 }
 0x163   : > { %385 = vrot.lane.b32.xlu0 %v682_v15, %s871_s23 }
 0x164   : > { %v684_v18 = vpop.eup %683 }
 0x165   : > { %v374_v19 = vadd.f32 1.0, %v684_v18 }
 0x167   : > { %380 = vrot.lane.b32.xlu0 %v378_v16, %s872_s25  ;;  %685 = vrcp.f32 %v374_v19 }
 0x171   : > { %v686_v20 = vpop.eup %685 }
 0x1d5   : > { %v386_v21 = vpop.permute.xlu0 %385 }
 0x1d6   : > { %v388_v22 = vmul.f32 %v686_v20, %v386_v21 }
 0x1d8   : > { %390 = vrot.lane.b32.xlu1 %v388_v22, %s872_s25 }
 0x1d9   : > { %v381_v23 = vpop.permute.xlu0 %380 }
 0x1da   : > { %v383_v24 = vmul.f32 %v686_v20, %v381_v23 }
 0x24a   : > { %v391_v25 = vpop.permute.xlu1 %390 }
 0x24b   : > { %v393_v26 = vadd.f32 %v391_v25, %v383_v24 }
 0x24d   : > { %687 = vtanh.f32 %v393_v26  ;;  %401 = vrot.lane.b32.xlu0 %v393_v26, %s873_s29 }
 0x257   : > { %v688_v27 = vpop.eup %687 }
 0x258   : > { %396 = vrot.lane.b32.xlu1 %v688_v27, %s871_s23 }
 0x2bf   : > { %v402_v28 = vpop.permute.xlu0 %401 }
 0x2c0   : > { %404 = vst.msk [vmem:[#allocation2] sm:$0xff] %vm296_vm2, %v402_v28 }
 0x2ca   : > { %v397_v29 = vpop.permute.xlu1 %396 }
 0x2cb   : > { %v399_v30 = vmul.f32 %v686_v20, %v397_v29 }
 0x2cd   : > { %406 = vrot.lane.b32.xlu0 %v399_v30, %s872_s25  ;;  %410 = vrot.lane.b32.xlu1 %v399_v30, %s871_s23 }
 0x33f   : > { %v407_v31 = vpop.permute.xlu0 %406  ;;  %v411_v32 = vpop.permute.xlu1 %410 }
 0x340   : > { %409 = vst.msk [vmem:[#allocation3] sm:$0xff] %vm296_vm2, %v407_v31  ;;  %v413_v33 = vsel %vm296_vm2, %v402_v28, %v411_v32 }
 0x341   : > { %415 = vst.msk [vmem:[%s1091_s27] sm:$0xff] %vm414_vm3, %v413_v33 }
 0x342   : > { %788 = shalt.err (!%p785_p9)
}
 0x343   : > { %s789_s21 = scalar_lea.hbm %s1105_s24, 128  ;;  %s793_s13 = scalar_lea.hbm %s1160_s4, 768 }
 0x344   : > { %p790_p12 = scmp.ne.s32.totalorder %s1105_s24, %s789_s21  ;;  %p794_p3 = scmp.lt.u32.totalorder %s1105_s24, %s1160_s4 }
 0x345   : > { %p795_p10 = scmp.lt.u32.totalorder %s793_s13, %s789_s21  ;;  %p797_p2 = scmp.lt.u32.totalorder %s789_s21, %s1105_s24 }
 0x346   : > { %p791_p11 = pnand %p790_p12, %p1025_p8 }
 0x347   : > { %p796_p1 = por %p795_p10, %p794_p3 }
 0x348   : > { %p792_p7 = pneg %p791_p11 }
 0x349   : > { %p798_p4 = por %p797_p2, %p796_p1 }
 0x34b   : > { %p799_p6 = pnand %p798_p4, %p792_p7 }
 0x34d   : > { %802 = shalt.err (!%p799_p6)
}
 0x34e   : > { %600 = dma.vmem_to_hbm [thread:$0]  (%p1025_p8), %s1107_s10, 128, %s1105_s24, %s417_s18  }
 0x34f PF: > { %p622_p13 = scmp.ge.s32.totalorder %s861_s20, 2  ;;  %s443_s29 = sand.u32 1, %s841_s15  }
 0x350   : > { %p1177_p0 = scmp.ne.s32.totalorder %s1168_s26, 0  ;;  %s444_s14 = scalar_lea.sflag [#allocation6], %s443_s29 }
 0x352   : > { %p614_p5 = pnand %p622_p13, %p1177_p0 }
 0x354   : > { %836 = dma.done.wait (!%p614_p5), %s444_s14, 128  }
 0x355   : > { %838 = vsyncadd (!%p614_p5), %s444_s14, 4294967168  ;;  %s21_s20 = sadd.s32 1, %s861_s20   ;;  %s1178_s15 = smov %s845_s16 }
 0x356   : > { %p18_p9 = scmp.ge.s32.totalorder %s21_s20, 8   ;;  %s1179_s16 = smov %s849_s17 }
 0x357   : > { %s1180_s17 = smov %s1034_s9  ;;  %s1181_s18 = smov %s857_s19 }
 0x358   : > { %s1182_s19 = smov %s1184_s22  ;;  %20 = sbr.rel (!%p18_p9) target bundleno = 7 (0x7), region = 97 }
 0x35f   :  { %449 = vsyncpa [#allocation5], 1 }
 0x360   :  { %451 = vsyncpa [#allocation5 + $0x1], 1 }
 0x361   :  { %452 = vsyncpa [#allocation8], 1 }
 0x362   :  { %453 = vsyncpa [#allocation6], 1 }
 0x363   :  { %455 = vsyncpa [#allocation6 + $0x1], 1 }

</bundles_post_ra>
